<compile_context>
chip_gen: v7x
topology: tpu7x:2x2x1
jax: 0.10.0
libtpu: 0.0.40
codegen_flags: <defaults>
</compile_context>

<pallas_src>
import jax
import jax.numpy as jnp
from jax.experimental import pallas as pl
from jax.experimental.pallas import tpu as pltpu

_LANE = 128
_MAX_BLOCK_ELEMS = 1 << 20      # 1M f32 = 4 MiB per stream per block
_SMALL_N_FASTPATH = 1024        # below one (8,128) slab: plain jnp is cheaper


def _residual_psum_kernel(pred_ref, targ_ref, res_ref, psum_ref):
    """Per-block: residuals in f32 + per-lane partial sum of this block."""
    r = pred_ref[...].astype(jnp.float32) - targ_ref[...].astype(jnp.float32)
    res_ref[...] = r
    # Per-lane (sublane-axis) partial sum; the final tiny reduce happens in JAX.
    psum_ref[...] = jnp.sum(r, axis=0, keepdims=True)[None]


def _pick_geometry(n):
    """Return (width, block_rows, rows, grid, pad) with rows == grid * block_rows."""
    # Lane width: widest 128-multiple that divides n and leaves >= 16 rows
    # (so grid >= 2 is possible); else widest dividing n; else 128 + flat pad.
    width = None
    for w in (1024, 512, 256, 128):
        if n % w == 0 and n // w >= 16:
            width = w
            break
    if width is None:
        for w in (1024, 512, 256, 128):
            if n % w == 0:
                width = w
                break
    if width is None:
        width = _LANE
    rows_needed = -(-n // width)

    if rows_needed < 16:
        # Tiny: a single full-extent block (block dims == full array dims).
        block_rows, grid = rows_needed, 1
    else:
        max_block_rows = max(8, (_MAX_BLOCK_ELEMS // width) // 8 * 8)
        # Split rows as evenly as possible over >= 2 grid steps so the software
        # pipeline and v7x megacore sharding engage; wasted rows <= half a block.
        grid = max(2, -(-rows_needed // max_block_rows))
        block_rows = ((-(-rows_needed // grid) + 7) // 8) * 8
        grid = -(-rows_needed // block_rows)
    rows = grid * block_rows
    pad = rows * width - n
    return width, block_rows, rows, grid, pad


def _vmem_limit_bytes():
    """Per-generation scoped VMEM budget: ~3/4 of physical, clamped to [32, 96] MiB."""
    try:
        info = pltpu.get_tpu_info()
        cap = int(getattr(info, "vmem_capacity_bytes", 64 * 1024 * 1024))
    except Exception:
        cap = 64 * 1024 * 1024
    return int(max(32 * 1024 * 1024, min(3 * cap // 4, 96 * 1024 * 1024)))


def _run_residual_kernel(p2, t2, block_rows, grid):
    rows, width = p2.shape
    n_elems = rows * width
    in_bytes = p2.dtype.itemsize + t2.dtype.itemsize
    cost = pl.CostEstimate(
        flops=2 * n_elems,
        transcendentals=0,
        bytes_accessed=n_elems * (in_bytes + 4) + grid * width * 4,
    )
    tile = pl.BlockSpec((block_rows, width), lambda i: (i, 0))
    psum_spec = pl.BlockSpec((1, 1, width), lambda i: (i, 0, 0))

    return pl.pallas_call(
        _residual_psum_kernel,
        out_shape=(
            jax.ShapeDtypeStruct((rows, width), jnp.float32),      # residuals
            jax.ShapeDtypeStruct((grid, 1, width), jnp.float32),   # partial sums
        ),
        grid=(grid,),
        in_specs=[tile, tile],
        out_specs=(tile, psum_spec),
        compiler_params=pltpu.CompilerParams(
            dimension_semantics=("parallel",),
            vmem_limit_bytes=_vmem_limit_bytes(),
        ),
        cost_estimate=cost,
    )(p2, t2)


def iqr_scaling_loss(predictions, targets, delta=1.0, quantile_range=(25, 75)):
    """JAX/Pallas equivalent of IQRScalingLoss.forward (delta unused, as in torch)."""
    lower_q, upper_q = quantile_range
    qs = jnp.array([lower_q / 100.0, upper_q / 100.0], dtype=jnp.float32)

    p = predictions.reshape(-1)
    t = targets.reshape(-1)
    n = p.shape[0]

    if n < _SMALL_N_FASTPATH:
        # Tiny tensors: pallas dispatch + padding is pure overhead; XLA fuses
        # the subtract with the reductions for free.
        r = p.astype(jnp.float32) - t.astype(jnp.float32)
        mean_res = jnp.mean(r)
        if n >= 4:
            q = jnp.quantile(r, qs)            # torch default "linear" interpolation
            return mean_res / (q[1] - q[0])    # no epsilon (IQR == 0 -> inf/nan)
        return mean_res

    width, block_rows, rows, grid, pad = _pick_geometry(n)
    if pad:
        # Zero padding on both inputs -> exactly-zero padded residuals, so no
        # mask is needed; padded residuals are excluded from the quantile below.
        p = jnp.pad(p, (0, pad))
        t = jnp.pad(t, (0, pad))
    p2 = p.reshape(rows, width)
    t2 = t.reshape(rows, width)

    res2, psums = _run_residual_kernel(p2, t2, block_rows, grid)
    mean_res = jnp.sum(psums) / n

    # n >= _SMALL_N_FASTPATH >= 4 here.
    residuals = res2.reshape(-1)
    if pad:
        residuals = residuals[:n]
    # TODO(synk): exact torch-"linear" quantiles need a global sort; a Pallas
    # selection/histogram quantile would be faster for huge n but inexact.
    q = jnp.quantile(residuals, qs)
    iqr = q[1] - q[0]                          # no epsilon, matching torch
    return mean_res / iqr


if __name__ == "__main__":
    key = jax.random.PRNGKey(0)
    kp, kt = jax.random.split(key)

    # Small NCHW-style prediction tensor (2048 elements) — exercises the
    # Pallas path: width=128, rows=16, grid=2 blocks of (8, 128), no padding.
    predictions = jax.random.normal(kp, (2, 4, 16, 16), dtype=jnp.float32)
    targets = jax.random.normal(kt, (2, 4, 16, 16), dtype=jnp.float32)

    loss = iqr_scaling_loss(predictions, targets)
    jax.block_until_ready(loss)

    print("KERNEL_OK")
</pallas_src>

<mosaic_0001>
module attributes {stable_mosaic.version = 11 : i64} {
  func.func @_residual_psum_kernel(%arg0: i32, %arg1: memref<8x128xf32, #tpu.memory_space<vmem>>, %arg2: memref<8x128xf32, #tpu.memory_space<vmem>>, %arg3: memref<8x128xf32, #tpu.memory_space<vmem>>, %arg4: memref<1x1x128xf32, #tpu.memory_space<vmem>>) attributes {dimension_semantics = [#tpu.dimension_semantics<parallel>], iteration_bounds = array<i64: 2>, scalar_prefetch = 0 : i64, scratch_operands = 0 : i64, tpu.core_type = #tpu.core_type<tc>, window_params = [{transform_indices = @transform_0, window_bounds = array<i64: 8, 128>}, {transform_indices = @transform_1, window_bounds = array<i64: 8, 128>}, {transform_indices = @transform_2, window_bounds = array<i64: 8, 128>}, {transform_indices = @transform_3, window_bounds = array<i64: 1, 1, 128>}]} {
    %c0 = arith.constant 0 : index
    %c0_0 = arith.constant 0 : index
    %0 = vector.load %arg1[%c0, %c0_0] : memref<8x128xf32, #tpu.memory_space<vmem>>, vector<8x128xf32>
    %c0_1 = arith.constant 0 : index
    %c0_2 = arith.constant 0 : index
    %1 = vector.load %arg2[%c0_1, %c0_2] : memref<8x128xf32, #tpu.memory_space<vmem>>, vector<8x128xf32>
    %2 = arith.subf %0, %1 : vector<8x128xf32>
    %c0_3 = arith.constant 0 : index
    %c0_4 = arith.constant 0 : index
    %3 = vector.load %arg3[%c0_3, %c0_4] : memref<8x128xf32, #tpu.memory_space<vmem>>, vector<8x128xf32>
    tpu.vector_store %arg3[%c0_3, %c0_4], %2 {strides = array<i32>} : memref<8x128xf32, #tpu.memory_space<vmem>>, vector<8x128xf32>,
    %cst = arith.constant dense<0.000000e+00> : vector<128xf32>
    %4 = vector.multi_reduction <add>, %2, %cst [0] : vector<8x128xf32> to vector<128xf32>
    %5 = vector.shape_cast %4 : vector<128xf32> to vector<1x128xf32>
    %6 = vector.shape_cast %5 : vector<1x128xf32> to vector<1x1x128xf32>
    %c0_5 = arith.constant 0 : index
    %c0_6 = arith.constant 0 : index
    %c0_7 = arith.constant 0 : index
    %7 = vector.load %arg4[%c0_5, %c0_6, %c0_7] : memref<1x1x128xf32, #tpu.memory_space<vmem>>, vector<1x1x128xf32>
    tpu.vector_store %arg4[%c0_5, %c0_6, %c0_7], %6 {strides = array<i32>} : memref<1x1x128xf32, #tpu.memory_space<vmem>>, vector<1x1x128xf32>,
    return
  }
  func.func @transform_0(%arg0: i32) -> (i32, i32) {
    %c0_i32 = arith.constant 0 : i32
    %c0_i32_0 = arith.constant 0 : i32
    return %arg0, %c0_i32 : i32, i32
  }
  func.func @transform_1(%arg0: i32) -> (i32, i32) {
    %c0_i32 = arith.constant 0 : i32
    %c0_i32_0 = arith.constant 0 : i32
    return %arg0, %c0_i32 : i32, i32
  }
  func.func @transform_2(%arg0: i32) -> (i32, i32) {
    %c0_i32 = arith.constant 0 : i32
    %c0_i32_0 = arith.constant 0 : i32
    return %arg0, %c0_i32 : i32, i32
  }
  func.func @transform_3(%arg0: i32) -> (i32, i32, i32) {
    %c0_i32 = arith.constant 0 : i32
    %c0_i32_0 = arith.constant 0 : i32
    %c0_i32_1 = arith.constant 0 : i32
    return %arg0, %c0_i32, %c0_i32_0 : i32, i32, i32
  }
}

</mosaic_0001>

<bundles_post_ra>
// kernel: tpu_custom_call.1
= control target key start
LH: loop header
LB: loop body
LE: loop exit
PB: predicated region body
PF: predicated region fallthrough
CT: control target
= control target key end

     0   :  { %9 = vsyncpa [#allocation3], 0  ;;  %s896_s0 = inlined_call_operand.hbm [shape: f32[16,128], index: 0, kind: input, shape index: {}]   ;;  %s897_s1 = inlined_call_operand.hbm [shape: f32[16,128], index: 1, kind: input, shape index: {}]   ;;  %s898_s2 = inlined_call_operand.hbm [shape: f32[16,128], index: 2, kind: output, shape index: {0}]   ;;  %s899_s3 = inlined_call_operand.hbm [shape: f32[2,1,128], index: 3, kind: output, shape index: {1}]  }
   0x1   :  { %11 = vsyncpa [#allocation3 + $0x1], 0 }
   0x2   :  { %12 = vsyncpa [#allocation6], 0 }
   0x3   :  { %14 = vsyncpa [#allocation6 + $0x1], 0 }
   0x4   :  { %15 = vsyncpa [#allocation4], 0 }
   0x5   :  { %17 = vsyncpa [#allocation4 + $0x1], 0 }
   0x6   :  { %18 = vsyncpa [#allocation9], 0 }
   0x7   :  { %20 = vsyncpa [#allocation9 + $0x1], 0  ;;  %s656_s12 = smov 0   ;;  %s658_s13 = smov 0  }
   0x8   :  { %s660_s14 = smov 0   ;;  %s662_s15 = smov 0  }
   0x9 LB: > { %s677_s16 = sadd.s32 4294967295, %s630_s15   ;;  %s396_s17 = sadd.s32 4294967294, %s630_s15   ;;  %s630_s15 = sphi %s662_s15, %s918_s15   ;;  %s626_s14 = sphi %s660_s14, %s917_s14   ;;  %s622_s13 = sphi %s658_s13, %s916_s13   ;;  %s618_s12 = sphi %s656_s12, %s915_s12  }
   0xa   : > { %s681_s18 = sadd.s32 1, %s630_s15   ;;  %s33_s19 = sadd.s32 1, %s626_s14 }
   0xb   : > { %s30_s20 = ssub.s32 %s630_s15, %s681_s18  ;;  %p40_p0 = scmp.ne.s32.totalorder %s626_s14, %s622_s13 }
   0xc   : > { %p31_p1 = scmp.eq.s32.totalorder %s30_s20, 0  ;;  %p41_p2 = scmp.eq.s32.totalorder %s630_s15, 0 }
   0xd   : > { %p46_p3 = scmp.ne.s32.totalorder %s622_s13, %s618_s12  ;;  %p47_p4 = scmp.eq.s32.totalorder %s677_s16, 0 }
   0xe   : > { %s693_s21 = scalar_select %p31_p1, %s626_s14, %s33_s19  }
   0xf   : > { %p695_p5 = por %p41_p2, %p40_p0  ;;  %p699_p6 = por %p47_p4, %p46_p3 }
  0x10   : > { %p96_p7 = scmp.eq.s32.totalorder %s677_s16, 1  ;;  %p102_p8 = scmp.eq.s32.totalorder %s396_s17, 1 }
  0x11   : > { %s903_s23 = scalar_select %p699_p6, 1, 0 }
  0x12   : > { %p434_p10 = scmp.lt.s32.totalorder %s630_s15, 2  ;;  %p706_p11 = por %p96_p7, %p40_p0 }
  0x13   : > { %p710_p12 = por %p102_p8, %p46_p3  ;;  %s715_s26 = sand.u32 1, %s626_s14  }
  0x14   : > { %s904_s24 = scalar_select %p706_p11, 1, 0 }
  0x15   : > { %s905_s25 = scalar_select %p710_p12, 1, 0 }
  0x16   : > { %s400_s27 = sshll.u32 %s630_s15, 7  ;;  %s399_s28 = sshll.u32 %s715_s26, 3 }
  0x17   : > { %s724_s4 = scalar_lea.hbm %s896_s0, %s400_s27  ;;  %s152_s5 = scalar_lea.vmem [#allocation2], %s399_s28 }
  0x18   : > { %s159_s6 = sshll.u32 %s152_s5, 4  ;;  %p730_p13 = pnand %p434_p10, %p695_p5  ;;  %s734_s6 = int_to_ptr.vmem [resolvable:$true] %s159_s6 }
  0x19   : > { %s149_s8 = scalar_lea.sflag [#allocation3], %s715_s26  ;;  %s468_s9 = scalar_lea.hbm %s724_s4, 128 }
  0x1a   : > { %p469_p2 = scmp.ne.s32.totalorder %s724_s4, %s468_s9  ;;  %p470_p3 = pneg %p730_p13 }
  0x1b   : > { %s473_s17 = scalar_lea.hbm %s896_s0, 256  ;;  %p474_p5 = scmp.lt.u32.totalorder %s724_s4, %s896_s0 }
  0x1c   : > { %p471_p4 = pnand %p470_p3, %p469_p2  ;;  %p475_p8 = scmp.lt.u32.totalorder %s473_s17, %s468_s9 }
  0x1d   : > { %p477_p9 = scmp.lt.u32.totalorder %s468_s9, %s724_s4 }
  0x1e   : > { %p472_p7 = pneg %p471_p4  ;;  %p476_p10 = por %p475_p8, %p474_p5 }
  0x20   : > { %p478_p0 = por %p477_p9, %p476_p10 }
  0x22   : > { %p479_p1 = pnand %p478_p0, %p472_p7 }
  0x24   : > { %482 = shalt.err (!%p479_p1)
}
  0x25   : > { %s483_s22 = scalar_lea.vmem %s734_s6, 128  ;;  %s632_s29 = smov [#allocation2]  }
  0x26   : > { %p484_p2 = scmp.ne.s32.totalorder %s734_s6, %s483_s22  ;;  %s488_s30 = sshll.u32 %s632_s29, 4  ;;  %s489_s30 = int_to_ptr.vmem [resolvable:$false] %s488_s30 }
  0x27   : > { %s490_s5 = scalar_lea.vmem %s489_s30, 256  ;;  %p491_p11 = scmp.lt.s32.totalorder %s734_s6, %s489_s30 }
  0x28   : > { %p486_p4 = pnand %p484_p2, %p470_p3  ;;  %p492_p5 = scmp.lt.s32.totalorder %s490_s5, %s483_s22 }
  0x2a   : > { %p487_p12 = pneg %p486_p4  ;;  %p493_p8 = por %p492_p5, %p491_p11 }
  0x2c   : > { %p494_p9 = pnand %p493_p8, %p487_p12 }
  0x2e   : > { %497 = shalt.err (!%p494_p9)
}
  0x2f   : > { %423 = dma.hbm_to_vmem [thread:$0]  (!%p730_p13), %s724_s4, 128, %s734_s6, %s149_s8  }
  0x30   : > { %p907_p0 = scmp.lt.s32.totalorder %s630_s15, 3  ;;  %p908_p1 = scmp.ge.s32.totalorder %s630_s15, 1 }
  0x31   : > { %s777_s17 = scalar_lea.hbm %s897_s1, %s400_s27  ;;  %s170_s19 = scalar_lea.vmem [#allocation5], %s399_s28 }
  0x32   : > { %p768_p7 = pnand %p908_p1, %p907_p0  ;;  %s177_s20 = sshll.u32 %s170_s19, 4  ;;  %s178_s20 = int_to_ptr.vmem [resolvable:$true] %s177_s20 }
  0x33   : > { %s167_s4 = scalar_lea.sflag [#allocation6], %s715_s26  ;;  %s498_s6 = scalar_lea.hbm %s777_s17, 128 }
  0x34   : > { %s909_s9 = scalar_select %p768_p7, 1, 0 }
  0x35   : > { %p499_p11 = scmp.ne.s32.totalorder %s777_s17, %s498_s6  ;;  %s503_s27 = scalar_lea.hbm %s897_s1, 256 }
  0x36   : > { %p504_p2 = scmp.lt.u32.totalorder %s777_s17, %s897_s1  ;;  %p505_p4 = scmp.lt.u32.totalorder %s503_s27, %s498_s6 }
  0x37   : > { %p501_p12 = pnand %p499_p11, %p470_p3  ;;  %p507_p8 = scmp.lt.u32.totalorder %s498_s6, %s777_s17 }
  0x38   : > { %p506_p5 = por %p505_p4, %p504_p2 }
  0x39   : > { %p502_p10 = pneg %p501_p12 }
  0x3a   : > { %p508_p9 = por %p507_p8, %p506_p5 }
  0x3c   : > { %p509_p0 = pnand %p508_p9, %p502_p10 }
  0x3e   : > { %512 = shalt.err (!%p509_p0)
}
  0x3f   : > { %s513_s26 = scalar_lea.vmem %s178_s20, 128  ;;  %s633_s28 = smov [#allocation5]  }
  0x40   : > { %p514_p1 = scmp.ne.s32.totalorder %s178_s20, %s513_s26  ;;  %s518_s5 = sshll.u32 %s633_s28, 4  ;;  %s519_s5 = int_to_ptr.vmem [resolvable:$false] %s518_s5 }
  0x41   : > { %s520_s10 = scalar_lea.vmem %s519_s5, 256  ;;  %p521_p6 = scmp.lt.s32.totalorder %s178_s20, %s519_s5 }
  0x42   : > { %p516_p11 = pnand %p514_p1, %p470_p3  ;;  %p522_p7 = scmp.lt.s32.totalorder %s520_s10, %s513_s26 }
  0x44   : > { %p517_p12 = pneg %p516_p11  ;;  %p523_p2 = por %p522_p7, %p521_p6 }
  0x46   : > { %p524_p4 = pnand %p523_p2, %p517_p12 }
  0x48   : > { %527 = shalt.err (!%p524_p4)
}
  0x49   : > { %426 = dma.hbm_to_vmem [thread:$0]  (!%p730_p13), %s777_s17, 128, %s178_s20, %s167_s4  }
  0x4a   : > { %p910_p10 = scmp.ne.s32.totalorder %s909_s9, 0 }
  0x4b   : > { %s804_s11 = sand.u32 (!%p910_p10), 1, %s622_s13   ;;  %p911_p3 = scmp.ne.s32.totalorder (!%p910_p10), %s903_s23, 0 }
  0x4c   : > { %186 = sbr.rel (%p910_p10) target bundleno = 137 (0x89), region = 28  ;;  %s404_s19 = sshll.u32 (!%p910_p10), %s804_s11, 3 }
  0x4d   : > { %s189_s6 = scalar_lea.sflag (!%p910_p10), [#allocation3], %s804_s11  ;;  %s192_s8 = scalar_lea.vmem (!%p910_p10), [#allocation2], %s404_s19 }
  0x53   : > { %601 = dma.done.wait (%p911_p3), %s189_s6, 128  }
  0x54   : > { %603 = vsyncadd (%p911_p3), %s189_s6, 4294967168  ;;  %s198_s7 = scalar_lea.sflag [#allocation6], %s804_s11  ;;  %s201_s17 = scalar_lea.vmem [#allocation5], %s404_s19 }
  0x55   : > { %605 = dma.done.wait (%p911_p3), %s198_s7, 128  }
  0x56   : > { %607 = vsyncadd (%p911_p3), %s198_s7, 4294967168  ;;  %s226_s9 = scalar_lea.vmem [#allocation7], %s404_s19  ;;  %s408_s4 = sshll.u32 %s677_s16, 7  ;;  %v233_v0 = vld [vmem:[%s192_s8] sm:$0xff]  ;;  %v234_v1 = vld [vmem:[%s201_s17] sm:$0xff] }
  0x57   : > { %s262_s20 = sshll.u32 %s226_s9, 4  ;;  %v235_v2 = vsub.f32 %v233_v0, %v234_v1  ;;  %s823_s29 = scalar_lea.hbm %s898_s2, %s408_s4  ;;  %s818_s20 = int_to_ptr.vmem [resolvable:$true] %s262_s20 }
  0x58   : > { %s245_s23 = scalar_lea.sflag [#allocation4], %s804_s11  ;;  %s528_s30 = scalar_lea.vmem %s818_s20, 128 }
  0x59   : > { %236 = vst [vmem:[%s226_s9] sm:$0xff] %v235_v2  ;;  %v237_v3 = vrot.slane %v235_v2, 4  ;;  %p529_p6 = scmp.ne.s32.totalorder %s818_s20, %s528_s30  ;;  %p912_p13 = scmp.ne.s32.totalorder %s904_s24, 0 }
  0x5a   : > { %s634_s26 = smov [#allocation7]  }
  0x5b   : > { %p530_p7 = pnand %p529_p6, %p912_p13  ;;  %s532_s28 = sshll.u32 %s634_s26, 4  ;;  %s533_s28 = int_to_ptr.vmem [resolvable:$false] %s532_s28 }
  0x5c   : > { %s534_s5 = scalar_lea.vmem %s533_s28, 256  ;;  %p535_p8 = scmp.lt.s32.totalorder %s818_s20, %s533_s28 }
  0x5d   : > { %p531_p5 = pneg %p530_p7  ;;  %p536_p9 = scmp.lt.s32.totalorder %s534_s5, %s528_s30 }
  0x5f   : > { %p537_p0 = por %p536_p9, %p535_p8 }
  0x61   : > { %p538_p1 = pnand %p537_p0, %p531_p5 }
  0x63   : > { %541 = shalt.err (!%p538_p1)
}
  0x64   : > { %s542_s10 = scalar_lea.hbm %s823_s29, 128  ;;  %s546_s8 = scalar_lea.hbm %s898_s2, 256 }
  0x65   : > { %p543_p11 = scmp.ne.s32.totalorder %s823_s29, %s542_s10  ;;  %p547_p4 = scmp.lt.u32.totalorder %s823_s29, %s898_s2 }
  0x66   : > { %p548_p10 = scmp.lt.u32.totalorder %s546_s8, %s542_s10  ;;  %p550_p6 = scmp.lt.u32.totalorder %s542_s10, %s823_s29 }
  0x67   : > { %p544_p12 = pnand %p543_p11, %p912_p13 }
  0x68   : > { %p549_p3 = por %p548_p10, %p547_p4 }
  0x69   : > { %p545_p2 = pneg %p544_p12 }
  0x6a   : > { %p551_p7 = por %p550_p6, %p549_p3 }
  0x6c   : > { %p552_p5 = pnand %p551_p7, %p545_p2 }
  0x6e   : > { %555 = shalt.err (!%p552_p5)
}
  0x6f   : > { %416 = dma.vmem_to_hbm [thread:$0]  (%p912_p13), %s818_s20, 128, %s823_s29, %s245_s23   ;;  %v238_v4 = vadd.f32 %v237_v3, %v235_v2 }
  0x70   : > { %s232_s9 = scalar_lea.vmem [#allocation8], %s804_s11  ;;  %s409_s22 = sshll.u32 %s677_s16, 4 }
  0x71   : > { %v239_v5 = vrot.slane %v238_v4, 2  ;;  %s275_s4 = sshll.u32 %s232_s9, 4  ;;  %s854_s26 = scalar_lea.hbm %s899_s3, %s409_s22  ;;  %s849_s4 = int_to_ptr.vmem [resolvable:$true] %s275_s4 }
  0x72   : > { %s250_s20 = scalar_lea.sflag [#allocation9], %s804_s11  ;;  %s556_s29 = scalar_lea.vmem %s849_s4, 16 }
  0x73   : > { %v240_v6 = vadd.f32 %v239_v5, %v238_v4  ;;  %p557_p8 = scmp.ne.s32.totalorder %s849_s4, %s556_s29  ;;  %s635_s16 = smov [#allocation8]  }
  0x74   : > { %s560_s23 = sshll.u32 %s635_s16, 4  ;;  %s561_s23 = int_to_ptr.vmem [resolvable:$false] %s560_s23 }
  0x75   : > { %v241_v7 = vrot.slane %v240_v6, 1  ;;  %p558_p9 = pnand %p557_p8, %p912_p13  ;;  %s562_s28 = scalar_lea.vmem %s561_s23, 32 }
  0x76   : > { %p563_p1 = scmp.lt.s32.totalorder %s849_s4, %s561_s23  ;;  %p564_p11 = scmp.lt.s32.totalorder %s562_s28, %s556_s29 }
  0x77   : > { %v242_v8 = vadd.f32 %v241_v7, %v240_v6  ;;  %p559_p0 = pneg %p558_p9 }
  0x78   : > { %p565_p12 = por %p564_p11, %p563_p1 }
  0x79   : > { %243 = vst [vmem:[%s232_s9] sm:$0x1] %v242_v8 }
  0x7a   : > { %p566_p2 = pnand %p565_p12, %p559_p0 }
  0x7c   : > { %569 = shalt.err (!%p566_p2)
}
  0x7d   : > { %s570_s11 = scalar_lea.hbm %s854_s26, 16  ;;  %s574_s19 = scalar_lea.hbm %s899_s3, 32 }
  0x7e   : > { %p571_p4 = scmp.ne.s32.totalorder %s854_s26, %s570_s11  ;;  %p575_p6 = scmp.lt.u32.totalorder %s854_s26, %s899_s3 }
  0x7f   : > { %p576_p7 = scmp.lt.u32.totalorder %s574_s19, %s570_s11  ;;  %p578_p8 = scmp.lt.u32.totalorder %s570_s11, %s854_s26 }
  0x80   : > { %p572_p10 = pnand %p571_p4, %p912_p13 }
  0x81   : > { %p577_p5 = por %p576_p7, %p575_p6 }
  0x82   : > { %p573_p3 = pneg %p572_p10 }
  0x83   : > { %p579_p9 = por %p578_p8, %p577_p5 }
  0x85   : > { %p580_p0 = pnand %p579_p9, %p573_p3 }
  0x87   : > { %583 = shalt.err (!%p580_p0)
}
  0x88   : > { %417 = dma.vmem_to_hbm [thread:$0]  (%p912_p13), %s849_s4, 16, %s854_s26, %s250_s20  }
  0x89 PF: > { %s287_s7 = sand.u32 1, %s618_s12   ;;  %p913_p1 = scmp.ne.s32.totalorder %s905_s25, 0 }
  0x8a   : > { %p914_p11 = scmp.ge.s32.totalorder %s630_s15, 2  ;;  %s288_s17 = scalar_lea.sflag [#allocation4], %s287_s7 }
  0x8c   : > { %p428_p12 = pnand %p914_p11, %p913_p1 }
  0x8e   : > { %609 = dma.done.wait (!%p428_p12), %s288_s17, 128  }
  0x8f   : > { %611 = vsyncadd (!%p428_p12), %s288_s17, 4294967168  ;;  %s297_s9 = scalar_lea.sflag [#allocation9], %s287_s7 }
  0x90   : > { %613 = dma.done.wait (!%p428_p12), %s297_s9, 16  }
  0x91   : > { %615 = vsyncadd (!%p428_p12), %s297_s9, 4294967280  ;;  %p23_p13 = scmp.ge.s32.totalorder %s681_s18, 4   ;;  %s915_s12 = smov %s622_s13 }
  0x92   : > { %s916_s13 = smov %s626_s14  ;;  %s917_s14 = smov %s693_s21 }
  0x93   : > { %s918_s15 = smov %s681_s18  ;;  %25 = sbr.rel (!%p23_p13) target bundleno = 9 (0x9), region = 103 }
  0x9a   :  { %301 = vsyncpa [#allocation3], 1 }
  0x9b   :  { %303 = vsyncpa [#allocation3 + $0x1], 1 }
  0x9c   :  { %304 = vsyncpa [#allocation6], 1 }
  0x9d   :  { %306 = vsyncpa [#allocation6 + $0x1], 1 }
  0x9e   :  { %307 = vsyncpa [#allocation4], 1 }
  0x9f   :  { %309 = vsyncpa [#allocation4 + $0x1], 1 }
  0xa0   :  { %310 = vsyncpa [#allocation9], 1 }
  0xa1   :  { %312 = vsyncpa [#allocation9 + $0x1], 1 }

</bundles_post_ra>
